<compile_context>
chip_gen: v6e
topology: v6e:2x2x1
jax: 0.10.0
libtpu: 0.0.40
codegen_flags: <defaults>
</compile_context>

<pallas_src>
import math
import functools

import jax
import jax.numpy as jnp
from jax.experimental import pallas as pl
from jax.experimental.pallas import tpu as pltpu


_VMEM_LIMIT_BYTES = 48 * 1024 * 1024  # ~25% headroom under v7x's 64 MiB VMEM.


def _pick_tile(n: int, target: int) -> int:
    """Largest tile <= target that divides n (sublane-friendly), else n."""
    if n <= target:
        return n
    for cand in (512, 384, 256, 192, 128, 64, 32, 16, 8):
        if cand <= target and n % cand == 0:
            return cand
    return n


# ---------------------------------------------------------------------------
# Stage 1: fused Q/K/V projection -> head-major bf16 layout
# ---------------------------------------------------------------------------
def _qkv_proj_kernel(xq_ref, xk_ref, xv_ref, wq_ref, wk_ref, wv_ref,
                     qh_ref, kh_ref, vh_ref, *, num_heads, head_dim, scale):
    # xq/xk/xv: (1, TS, H) bf16; weights: (H, H) bf16 (constant index_map,
    # DMA'd once); outputs: (1, nH, TS, hd) bf16.
    xq = xq_ref[0]
    xk = xk_ref[0]
    xv = xv_ref[0]

    # bf16 in / f32 accumulate on the MXU.  Fold the 1/sqrt(hd) attention
    # scale into Q here (free VPU multiply on a small tile).
    q = jnp.dot(xq, wq_ref[...], preferred_element_type=jnp.float32) * scale
    k = jnp.dot(xk, wk_ref[...], preferred_element_type=jnp.float32)
    v = jnp.dot(xv, wv_ref[...], preferred_element_type=jnp.float32)

    # Split the projected hidden dim into heads (static lane slices) and store
    # head-major so the attention kernel needs no reshape/transpose at all.
    for n in range(num_heads):
        lo = n * head_dim
        hi = lo + head_dim
        qh_ref[0, n] = q[:, lo:hi].astype(qh_ref.dtype)
        kh_ref[0, n] = k[:, lo:hi].astype(kh_ref.dtype)
        vh_ref[0, n] = v[:, lo:hi].astype(vh_ref.dtype)


# ---------------------------------------------------------------------------
# Stage 2: flash-style attention (heads batched) + fused output projection
# ---------------------------------------------------------------------------
def _flash_mha_kernel(q_ref, k_ref, v_ref, wo_ref, o_ref,
                      m_sc, l_sc, acc_sc, *, num_heads):
    kv = pl.program_id(2)

    @pl.when(kv == 0)
    def _():
        m_sc[...] = jnp.full(m_sc.shape, -jnp.inf, dtype=m_sc.dtype)
        l_sc[...] = jnp.zeros(l_sc.shape, dtype=l_sc.dtype)
        acc_sc[...] = jnp.zeros(acc_sc.shape, dtype=acc_sc.dtype)

    q = q_ref[0]                               # (nH, TQ,  hd) bf16, pre-scaled
    k = k_ref[0]                               # (nH, TKV, hd) bf16
    v = v_ref[0]                               # (nH, TKV, hd) bf16

    # Q·K^T with heads as the batch dim of one dot_general: no transpose,
    # no per-head unrolled loop, f32 accumulation.
    s = jnp.einsum("nqd,nkd->nqk", q, k,
                   preferred_element_type=jnp.float32)         # (nH, TQ, TKV)

    m_prev = m_sc[...]
    m_new = jnp.maximum(m_prev, jnp.max(s, axis=-1, keepdims=True))
    alpha = jnp.exp(m_prev - m_new)
    p = jnp.exp(s - m_new)

    l_sc[...] = alpha * l_sc[...] + jnp.sum(p, axis=-1, keepdims=True)
    acc_sc[...] = alpha * acc_sc[...] + jnp.einsum(
        "nqk,nkd->nqd", p.astype(v.dtype), v,
        preferred_element_type=jnp.float32)                    # (nH, TQ, hd)
    m_sc[...] = m_new

    @pl.when(kv == pl.num_programs(2) - 1)
    def _():
        inv_l = pl.reciprocal(l_sc[...], approx=True)          # EUP slot
        attn = (acc_sc[...] * inv_l).astype(jnp.bfloat16)      # (nH, TQ, hd)
        # Fused output projection: concat_heads(attn) @ W_o written as a sum
        # of per-head row-blocks of W_o (wo_ref is (nH, hd, H)).  Lane-dense
        # (TQ, H) output tile.
        out = jnp.dot(attn[0], wo_ref[0], preferred_element_type=jnp.float32)
        for n in range(1, num_heads):
            out = out + jnp.dot(attn[n], wo_ref[n],
                                preferred_element_type=jnp.float32)
        o_ref[0] = out.astype(o_ref.dtype)


# ---------------------------------------------------------------------------
# Wrapper
# ---------------------------------------------------------------------------
def multi_head_attention(queries, keys, values, w_q, w_k, w_v, w_o,
                         num_heads: int, *,
                         q_tile: int = 256, kv_tile: int = 512,
                         proj_tile: int = 512):
    """queries/keys/values: (B, S, H); w_*: (H, H) pre-transposed (x @ W)."""
    B, S, H = queries.shape
    assert H % num_heads == 0
    hd = H // num_heads
    out_dtype = queries.dtype

    # bf16 operands in / f32 accumulation is the native MXU mode.
    cast = lambda a: a.astype(jnp.bfloat16)
    xq, xk, xv = cast(queries), cast(keys), cast(values)
    wq, wk, wv = cast(w_q), cast(w_k), cast(w_v)
    # W_o rows grouped by head: block n multiplies head n's output slice.
    wo_h = cast(w_o).reshape(num_heads, hd, H)

    ts = _pick_tile(S, proj_tile)
    tq = _pick_tile(S, q_tile)
    tkv = _pick_tile(S, kv_tile)

    # ---------------- stage 1: projections ----------------
    head_shape = jax.ShapeDtypeStruct((B, num_heads, S, hd), jnp.bfloat16)
    x_spec = pl.BlockSpec((1, ts, H), lambda b, s: (b, s, 0))
    w_spec = pl.BlockSpec((H, H), lambda b, s: (0, 0))        # constant: hoisted DMA
    h_spec = pl.BlockSpec((1, num_heads, ts, hd), lambda b, s: (b, 0, s, 0))

    qh, kh, vh = pl.pallas_call(
        functools.partial(_qkv_proj_kernel, num_heads=num_heads,
                          head_dim=hd, scale=1.0 / math.sqrt(hd)),
        out_shape=(head_shape, head_shape, head_shape),
        grid_spec=pltpu.PrefetchScalarGridSpec(
            num_scalar_prefetch=0,
            grid=(B, S // ts),
            in_specs=[x_spec, x_spec, x_spec, w_spec, w_spec, w_spec],
            out_specs=[h_spec, h_spec, h_spec],
        ),
        compiler_params=pltpu.CompilerParams(
            dimension_semantics=("parallel", "parallel"),
            vmem_limit_bytes=_VMEM_LIMIT_BYTES),
    )(xq, xk, xv, wq, wk, wv)

    # ---------------- stage 2: flash attention + W_o ----------------
    q_spec = pl.BlockSpec((1, num_heads, tq, hd), lambda b, qi, ki: (b, 0, qi, 0))
    kv_spec = pl.BlockSpec((1, num_heads, tkv, hd), lambda b, qi, ki: (b, 0, ki, 0))
    wo_spec = pl.BlockSpec((num_heads, hd, H), lambda b, qi, ki: (0, 0, 0))
    o_spec = pl.BlockSpec((1, tq, H), lambda b, qi, ki: (b, qi, 0))

    out = pl.pallas_call(
        functools.partial(_flash_mha_kernel, num_heads=num_heads),
        out_shape=jax.ShapeDtypeStruct((B, S, H), out_dtype),
        grid_spec=pltpu.PrefetchScalarGridSpec(
            num_scalar_prefetch=0,
            grid=(B, S // tq, S // tkv),
            in_specs=[q_spec, kv_spec, kv_spec, wo_spec],
            out_specs=o_spec,
            scratch_shapes=[
                pltpu.VMEM((num_heads, tq, 1), jnp.float32),   # running max m
                pltpu.VMEM((num_heads, tq, 1), jnp.float32),   # running sum l
                pltpu.VMEM((num_heads, tq, hd), jnp.float32),  # running acc
            ]),
        compiler_params=pltpu.CompilerParams(
            dimension_semantics=("parallel", "parallel", "arbitrary"),
            vmem_limit_bytes=_VMEM_LIMIT_BYTES),
    )(qh, kh, vh, wo_h)
    return out


# ---------------------------------------------------------------------------
# Pure-JAX reference mirroring the PyTorch module (eval mode)
# ---------------------------------------------------------------------------
def _reference_mha(queries, keys, values, w_q, w_k, w_v, w_o, num_heads):
    def transpose_qkv(X):
        B, S, H = X.shape
        X = X.reshape(B, S, num_heads, -1).transpose(0, 2, 1, 3)
        return X.reshape(-1, X.shape[2], X.shape[3])

    def transpose_output(X):
        X = X.reshape(-1, num_heads, X.shape[1], X.shape[2])
        X = X.transpose(0, 2, 1, 3)
        return X.reshape(X.shape[0], X.shape[1], -1)

    q = transpose_qkv(queries @ w_q)
    k = transpose_qkv(keys @ w_k)
    v = transpose_qkv(values @ w_v)
    d = q.shape[-1]
    scores = jnp.einsum("bqd,bkd->bqk", q, k) / math.sqrt(d)
    attn = jax.nn.softmax(scores, axis=-1)
    out = jnp.einsum("bqk,bkd->bqd", attn, v)
    return transpose_output(out) @ w_o


if __name__ == "__main__":
    B, S, H = 2, 8, 32
    num_heads = 4

    key = jax.random.PRNGKey(0)
    k_q, k_k, k_v, kwq, kwk, kwv, kwo = jax.random.split(key, 7)

    queries = jax.random.normal(k_q, (B, S, H), dtype=jnp.float32)
    keys = jax.random.normal(k_k, (B, S, H), dtype=jnp.float32)
    values = jax.random.normal(k_v, (B, S, H), dtype=jnp.float32)

    # nn.Linear-style uniform init, stored as (H_in, H_out) so kernels do x @ W.
    bound = 1.0 / math.sqrt(H)
    w_q = jax.random.uniform(kwq, (H, H), jnp.float32, -bound, bound)
    w_k = jax.random.uniform(kwk, (H, H), jnp.float32, -bound, bound)
    w_v = jax.random.uniform(kwv, (H, H), jnp.float32, -bound, bound)
    w_o = jax.random.uniform(kwo, (H, H), jnp.float32, -bound, bound)

    out = multi_head_attention(queries, keys, values,
                               w_q, w_k, w_v, w_o, num_heads)
    out = jax.block_until_ready(out)

    # Reference on bf16-rounded operands (the kernel runs its MXU in bf16).
    r = lambda a: a.astype(jnp.bfloat16).astype(jnp.float32)
    ref = _reference_mha(r(queries), r(keys), r(values),
                         r(w_q), r(w_k), r(w_v), r(w_o), num_heads)

    assert out.shape == (B, S, H)
    max_err = float(jnp.max(jnp.abs(out - ref)))
    assert jnp.allclose(out, ref, atol=3e-2, rtol=3e-2), (
        f"mismatch vs reference, max abs err = {max_err}")

    print("KERNEL_OK")
</pallas_src>

<mosaic_0001>
module attributes {stable_mosaic.version = 11 : i64} {
  func.func @_qkv_proj_kernel(%arg0: i32, %arg1: i32, %arg2: memref<1x8x32xbf16, #tpu.memory_space<vmem>>, %arg3: memref<1x8x32xbf16, #tpu.memory_space<vmem>>, %arg4: memref<1x8x32xbf16, #tpu.memory_space<vmem>>, %arg5: memref<32x32xbf16, #tpu.memory_space<vmem>>, %arg6: memref<32x32xbf16, #tpu.memory_space<vmem>>, %arg7: memref<32x32xbf16, #tpu.memory_space<vmem>>, %arg8: memref<1x4x8x8xbf16, #tpu.memory_space<vmem>>, %arg9: memref<1x4x8x8xbf16, #tpu.memory_space<vmem>>, %arg10: memref<1x4x8x8xbf16, #tpu.memory_space<vmem>>) attributes {dimension_semantics = [#tpu.dimension_semantics<parallel>, #tpu.dimension_semantics<parallel>], iteration_bounds = array<i64: 2, 1>, scalar_prefetch = 0 : i64, scratch_operands = 0 : i64, tpu.core_type = #tpu.core_type<tc>, window_params = [{transform_indices = @transform_0, window_bounds = array<i64: 1, 8, 32>}, {transform_indices = @transform_1, window_bounds = array<i64: 1, 8, 32>}, {transform_indices = @transform_2, window_bounds = array<i64: 1, 8, 32>}, {pipeline_mode = #tpu.pipeline_mode<synchronous>, transform_indices = @transform_3, window_bounds = array<i64: 32, 32>}, {pipeline_mode = #tpu.pipeline_mode<synchronous>, transform_indices = @transform_4, window_bounds = array<i64: 32, 32>}, {pipeline_mode = #tpu.pipeline_mode<synchronous>, transform_indices = @transform_5, window_bounds = array<i64: 32, 32>}, {transform_indices = @transform_6, window_bounds = array<i64: 1, 4, 8, 8>}, {transform_indices = @transform_7, window_bounds = array<i64: 1, 4, 8, 8>}, {transform_indices = @transform_8, window_bounds = array<i64: 1, 4, 8, 8>}]} {
    %c0 = arith.constant 0 : index
    %c0_0 = arith.constant 0 : index
    %c0_1 = arith.constant 0 : index
    %0 = vector.load %arg2[%c0, %c0_0, %c0_1] : memref<1x8x32xbf16, #tpu.memory_space<vmem>>, vector<1x8x32xbf16>
    %1 = vector.shape_cast %0 : vector<1x8x32xbf16> to vector<8x32xbf16>
    %c0_2 = arith.constant 0 : index
    %c0_3 = arith.constant 0 : index
    %c0_4 = arith.constant 0 : index
    %2 = vector.load %arg3[%c0_2, %c0_3, %c0_4] : memref<1x8x32xbf16, #tpu.memory_space<vmem>>, vector<1x8x32xbf16>
    %3 = vector.shape_cast %2 : vector<1x8x32xbf16> to vector<8x32xbf16>
    %c0_5 = arith.constant 0 : index
    %c0_6 = arith.constant 0 : index
    %c0_7 = arith.constant 0 : index
    %4 = vector.load %arg4[%c0_5, %c0_6, %c0_7] : memref<1x8x32xbf16, #tpu.memory_space<vmem>>, vector<1x8x32xbf16>
    %5 = vector.shape_cast %4 : vector<1x8x32xbf16> to vector<8x32xbf16>
    %c0_8 = arith.constant 0 : index
    %c0_9 = arith.constant 0 : index
    %6 = vector.load %arg5[%c0_8, %c0_9] : memref<32x32xbf16, #tpu.memory_space<vmem>>, vector<32x32xbf16>
    %cst = arith.constant dense<0.000000e+00> : vector<8x32xf32>
    %7 = tpu.matmul %1, %6, %cst {dimension_numbers = #tpu.dot_dimension_numbers<[1], [0], [0], [1], [0, 0, 1, 1], [], []>} : vector<8x32xbf16>, vector<32x32xbf16>, vector<8x32xf32> -> vector<8x32xf32>
    %cst_10 = arith.constant 0.353553385 : f32
    %8 = vector.broadcast %cst_10 : f32 to vector<8x32xf32>
    %9 = arith.mulf %7, %8 : vector<8x32xf32>
    %c0_11 = arith.constant 0 : index
    %c0_12 = arith.constant 0 : index
    %10 = vector.load %arg6[%c0_11, %c0_12] : memref<32x32xbf16, #tpu.memory_space<vmem>>, vector<32x32xbf16>
    %cst_13 = arith.constant dense<0.000000e+00> : vector<8x32xf32>
    %11 = tpu.matmul %3, %10, %cst_13 {dimension_numbers = #tpu.dot_dimension_numbers<[1], [0], [0], [1], [0, 0, 1, 1], [], []>} : vector<8x32xbf16>, vector<32x32xbf16>, vector<8x32xf32> -> vector<8x32xf32>
    %c0_14 = arith.constant 0 : index
    %c0_15 = arith.constant 0 : index
    %12 = vector.load %arg7[%c0_14, %c0_15] : memref<32x32xbf16, #tpu.memory_space<vmem>>, vector<32x32xbf16>
    %cst_16 = arith.constant dense<0.000000e+00> : vector<8x32xf32>
    %13 = tpu.matmul %5, %12, %cst_16 {dimension_numbers = #tpu.dot_dimension_numbers<[1], [0], [0], [1], [0, 0, 1, 1], [], []>} : vector<8x32xbf16>, vector<32x32xbf16>, vector<8x32xf32> -> vector<8x32xf32>
    %14 = vector.extract_strided_slice %9 {offsets = [0, 0], sizes = [8, 8], strides = [1, 1]} : vector<8x32xf32> to vector<8x8xf32>
    %15 = arith.truncf %14 : vector<8x8xf32> to vector<8x8xbf16>
    %c0_17 = arith.constant 0 : index
    %c0_18 = arith.constant 0 : index
    %c0_19 = arith.constant 0 : index
    %c0_20 = arith.constant 0 : index
    %16 = vector.load %arg8[%c0_17, %c0_18, %c0_19, %c0_20] : memref<1x4x8x8xbf16, #tpu.memory_space<vmem>>, vector<1x1x8x8xbf16>
    %17 = vector.shape_cast %16 : vector<1x1x8x8xbf16> to vector<8x8xbf16>
    %18 = vector.shape_cast %15 : vector<8x8xbf16> to vector<1x1x8x8xbf16>
    tpu.vector_store %arg8[%c0_17, %c0_18, %c0_19, %c0_20], %18 {strides = array<i32>} : memref<1x4x8x8xbf16, #tpu.memory_space<vmem>>, vector<1x1x8x8xbf16>,
    %19 = vector.extract_strided_slice %11 {offsets = [0, 0], sizes = [8, 8], strides = [1, 1]} : vector<8x32xf32> to vector<8x8xf32>
    %20 = arith.truncf %19 : vector<8x8xf32> to vector<8x8xbf16>
    %c0_21 = arith.constant 0 : index
    %c0_22 = arith.constant 0 : index
    %c0_23 = arith.constant 0 : index
    %c0_24 = arith.constant 0 : index
    %21 = vector.load %arg9[%c0_21, %c0_22, %c0_23, %c0_24] : memref<1x4x8x8xbf16, #tpu.memory_space<vmem>>, vector<1x1x8x8xbf16>
    %22 = vector.shape_cast %21 : vector<1x1x8x8xbf16> to vector<8x8xbf16>
    %23 = vector.shape_cast %20 : vector<8x8xbf16> to vector<1x1x8x8xbf16>
    tpu.vector_store %arg9[%c0_21, %c0_22, %c0_23, %c0_24], %23 {strides = array<i32>} : memref<1x4x8x8xbf16, #tpu.memory_space<vmem>>, vector<1x1x8x8xbf16>,
    %24 = vector.extract_strided_slice %13 {offsets = [0, 0], sizes = [8, 8], strides = [1, 1]} : vector<8x32xf32> to vector<8x8xf32>
    %25 = arith.truncf %24 : vector<8x8xf32> to vector<8x8xbf16>
    %c0_25 = arith.constant 0 : index
    %c0_26 = arith.constant 0 : index
    %c0_27 = arith.constant 0 : index
    %c0_28 = arith.constant 0 : index
    %26 = vector.load %arg10[%c0_25, %c0_26, %c0_27, %c0_28] : memref<1x4x8x8xbf16, #tpu.memory_space<vmem>>, vector<1x1x8x8xbf16>
    %27 = vector.shape_cast %26 : vector<1x1x8x8xbf16> to vector<8x8xbf16>
    %28 = vector.shape_cast %25 : vector<8x8xbf16> to vector<1x1x8x8xbf16>
    tpu.vector_store %arg10[%c0_25, %c0_26, %c0_27, %c0_28], %28 {strides = array<i32>} : memref<1x4x8x8xbf16, #tpu.memory_space<vmem>>, vector<1x1x8x8xbf16>,
    %29 = vector.extract_strided_slice %9 {offsets = [0, 8], sizes = [8, 8], strides = [1, 1]} : vector<8x32xf32> to vector<8x8xf32>
    %30 = arith.truncf %29 : vector<8x8xf32> to vector<8x8xbf16>
    %c0_29 = arith.constant 0 : index
    %c1 = arith.constant 1 : index
    %c0_30 = arith.constant 0 : index
    %c0_31 = arith.constant 0 : index
    %31 = vector.load %arg8[%c0_29, %c1, %c0_30, %c0_31] : memref<1x4x8x8xbf16, #tpu.memory_space<vmem>>, vector<1x1x8x8xbf16>
    %32 = vector.shape_cast %31 : vector<1x1x8x8xbf16> to vector<8x8xbf16>
    %33 = vector.shape_cast %30 : vector<8x8xbf16> to vector<1x1x8x8xbf16>
    tpu.vector_store %arg8[%c0_29, %c1, %c0_30, %c0_31], %33 {strides = array<i32>} : memref<1x4x8x8xbf16, #tpu.memory_space<vmem>>, vector<1x1x8x8xbf16>,
    %34 = vector.extract_strided_slice %11 {offsets = [0, 8], sizes = [8, 8], strides = [1, 1]} : vector<8x32xf32> to vector<8x8xf32>
    %35 = arith.truncf %34 : vector<8x8xf32> to vector<8x8xbf16>
    %c0_32 = arith.constant 0 : index
    %c1_33 = arith.constant 1 : index
    %c0_34 = arith.constant 0 : index
    %c0_35 = arith.constant 0 : index
    %36 = vector.load %arg9[%c0_32, %c1_33, %c0_34, %c0_35] : memref<1x4x8x8xbf16, #tpu.memory_space<vmem>>, vector<1x1x8x8xbf16>
    %37 = vector.shape_cast %36 : vector<1x1x8x8xbf16> to vector<8x8xbf16>
    %38 = vector.shape_cast %35 : vector<8x8xbf16> to vector<1x1x8x8xbf16>
    tpu.vector_store %arg9[%c0_32, %c1_33, %c0_34, %c0_35], %38 {strides = array<i32>} : memref<1x4x8x8xbf16, #tpu.memory_space<vmem>>, vector<1x1x8x8xbf16>,
    %39 = vector.extract_strided_slice %13 {offsets = [0, 8], sizes = [8, 8], strides = [1, 1]} : vector<8x32xf32> to vector<8x8xf32>
    %40 = arith.truncf %39 : vector<8x8xf32> to vector<8x8xbf16>
    %c0_36 = arith.constant 0 : index
    %c1_37 = arith.constant 1 : index
    %c0_38 = arith.constant 0 : index
    %c0_39 = arith.constant 0 : index
    %41 = vector.load %arg10[%c0_36, %c1_37, %c0_38, %c0_39] : memref<1x4x8x8xbf16, #tpu.memory_space<vmem>>, vector<1x1x8x8xbf16>
    %42 = vector.shape_cast %41 : vector<1x1x8x8xbf16> to vector<8x8xbf16>
    %43 = vector.shape_cast %40 : vector<8x8xbf16> to vector<1x1x8x8xbf16>
    tpu.vector_store %arg10[%c0_36, %c1_37, %c0_38, %c0_39], %43 {strides = array<i32>} : memref<1x4x8x8xbf16, #tpu.memory_space<vmem>>, vector<1x1x8x8xbf16>,
    %44 = vector.extract_strided_slice %9 {offsets = [0, 16], sizes = [8, 8], strides = [1, 1]} : vector<8x32xf32> to vector<8x8xf32>
    %45 = arith.truncf %44 : vector<8x8xf32> to vector<8x8xbf16>
    %c0_40 = arith.constant 0 : index
    %c2 = arith.constant 2 : index
    %c0_41 = arith.constant 0 : index
    %c0_42 = arith.constant 0 : index
    %46 = vector.load %arg8[%c0_40, %c2, %c0_41, %c0_42] : memref<1x4x8x8xbf16, #tpu.memory_space<vmem>>, vector<1x1x8x8xbf16>
    %47 = vector.shape_cast %46 : vector<1x1x8x8xbf16> to vector<8x8xbf16>
    %48 = vector.shape_cast %45 : vector<8x8xbf16> to vector<1x1x8x8xbf16>
    tpu.vector_store %arg8[%c0_40, %c2, %c0_41, %c0_42], %48 {strides = array<i32>} : memref<1x4x8x8xbf16, #tpu.memory_space<vmem>>, vector<1x1x8x8xbf16>,
    %49 = vector.extract_strided_slice %11 {offsets = [0, 16], sizes = [8, 8], strides = [1, 1]} : vector<8x32xf32> to vector<8x8xf32>
    %50 = arith.truncf %49 : vector<8x8xf32> to vector<8x8xbf16>
    %c0_43 = arith.constant 0 : index
    %c2_44 = arith.constant 2 : index
    %c0_45 = arith.constant 0 : index
    %c0_46 = arith.constant 0 : index
    %51 = vector.load %arg9[%c0_43, %c2_44, %c0_45, %c0_46] : memref<1x4x8x8xbf16, #tpu.memory_space<vmem>>, vector<1x1x8x8xbf16>
    %52 = vector.shape_cast %51 : vector<1x1x8x8xbf16> to vector<8x8xbf16>
    %53 = vector.shape_cast %50 : vector<8x8xbf16> to vector<1x1x8x8xbf16>
    tpu.vector_store %arg9[%c0_43, %c2_44, %c0_45, %c0_46], %53 {strides = array<i32>} : memref<1x4x8x8xbf16, #tpu.memory_space<vmem>>, vector<1x1x8x8xbf16>,
    %54 = vector.extract_strided_slice %13 {offsets = [0, 16], sizes = [8, 8], strides = [1, 1]} : vector<8x32xf32> to vector<8x8xf32>
    %55 = arith.truncf %54 : vector<8x8xf32> to vector<8x8xbf16>
    %c0_47 = arith.constant 0 : index
    %c2_48 = arith.constant 2 : index
    %c0_49 = arith.constant 0 : index
    %c0_50 = arith.constant 0 : index
    %56 = vector.load %arg10[%c0_47, %c2_48, %c0_49, %c0_50] : memref<1x4x8x8xbf16, #tpu.memory_space<vmem>>, vector<1x1x8x8xbf16>
    %57 = vector.shape_cast %56 : vector<1x1x8x8xbf16> to vector<8x8xbf16>
    %58 = vector.shape_cast %55 : vector<8x8xbf16> to vector<1x1x8x8xbf16>
    tpu.vector_store %arg10[%c0_47, %c2_48, %c0_49, %c0_50], %58 {strides = array<i32>} : memref<1x4x8x8xbf16, #tpu.memory_space<vmem>>, vector<1x1x8x8xbf16>,
    %59 = vector.extract_strided_slice %9 {offsets = [0, 24], sizes = [8, 8], strides = [1, 1]} : vector<8x32xf32> to vector<8x8xf32>
    %60 = arith.truncf %59 : vector<8x8xf32> to vector<8x8xbf16>
    %c0_51 = arith.constant 0 : index
    %c3 = arith.constant 3 : index
    %c0_52 = arith.constant 0 : index
    %c0_53 = arith.constant 0 : index
    %61 = vector.load %arg8[%c0_51, %c3, %c0_52, %c0_53] : memref<1x4x8x8xbf16, #tpu.memory_space<vmem>>, vector<1x1x8x8xbf16>
    %62 = vector.shape_cast %61 : vector<1x1x8x8xbf16> to vector<8x8xbf16>
    %63 = vector.shape_cast %60 : vector<8x8xbf16> to vector<1x1x8x8xbf16>
    tpu.vector_store %arg8[%c0_51, %c3, %c0_52, %c0_53], %63 {strides = array<i32>} : memref<1x4x8x8xbf16, #tpu.memory_space<vmem>>, vector<1x1x8x8xbf16>,
    %64 = vector.extract_strided_slice %11 {offsets = [0, 24], sizes = [8, 8], strides = [1, 1]} : vector<8x32xf32> to vector<8x8xf32>
    %65 = arith.truncf %64 : vector<8x8xf32> to vector<8x8xbf16>
    %c0_54 = arith.constant 0 : index
    %c3_55 = arith.constant 3 : index
    %c0_56 = arith.constant 0 : index
    %c0_57 = arith.constant 0 : index
    %66 = vector.load %arg9[%c0_54, %c3_55, %c0_56, %c0_57] : memref<1x4x8x8xbf16, #tpu.memory_space<vmem>>, vector<1x1x8x8xbf16>
    %67 = vector.shape_cast %66 : vector<1x1x8x8xbf16> to vector<8x8xbf16>
    %68 = vector.shape_cast %65 : vector<8x8xbf16> to vector<1x1x8x8xbf16>
    tpu.vector_store %arg9[%c0_54, %c3_55, %c0_56, %c0_57], %68 {strides = array<i32>} : memref<1x4x8x8xbf16, #tpu.memory_space<vmem>>, vector<1x1x8x8xbf16>,
    %69 = vector.extract_strided_slice %13 {offsets = [0, 24], sizes = [8, 8], strides = [1, 1]} : vector<8x32xf32> to vector<8x8xf32>
    %70 = arith.truncf %69 : vector<8x8xf32> to vector<8x8xbf16>
    %c0_58 = arith.constant 0 : index
    %c3_59 = arith.constant 3 : index
    %c0_60 = arith.constant 0 : index
    %c0_61 = arith.constant 0 : index
    %71 = vector.load %arg10[%c0_58, %c3_59, %c0_60, %c0_61] : memref<1x4x8x8xbf16, #tpu.memory_space<vmem>>, vector<1x1x8x8xbf16>
    %72 = vector.shape_cast %71 : vector<1x1x8x8xbf16> to vector<8x8xbf16>
    %73 = vector.shape_cast %70 : vector<8x8xbf16> to vector<1x1x8x8xbf16>
    tpu.vector_store %arg10[%c0_58, %c3_59, %c0_60, %c0_61], %73 {strides = array<i32>} : memref<1x4x8x8xbf16, #tpu.memory_space<vmem>>, vector<1x1x8x8xbf16>,
    return
  }
  func.func @transform_0(%arg0: i32, %arg1: i32) -> (i32, i32, i32) {
    %c0_i32 = arith.constant 0 : i32
    %c0_i32_0 = arith.constant 0 : i32
    return %arg0, %arg1, %c0_i32 : i32, i32, i32
  }
  func.func @transform_1(%arg0: i32, %arg1: i32) -> (i32, i32, i32) {
    %c0_i32 = arith.constant 0 : i32
    %c0_i32_0 = arith.constant 0 : i32
    return %arg0, %arg1, %c0_i32 : i32, i32, i32
  }
  func.func @transform_2(%arg0: i32, %arg1: i32) -> (i32, i32, i32) {
    %c0_i32 = arith.constant 0 : i32
    %c0_i32_0 = arith.constant 0 : i32
    return %arg0, %arg1, %c0_i32 : i32, i32, i32
  }
  func.func @transform_3(%arg0: i32, %arg1: i32) -> (i32, i32) {
    %c0_i32 = arith.constant 0 : i32
    %c0_i32_0 = arith.constant 0 : i32
    %c0_i32_1 = arith.constant 0 : i32
    return %c0_i32, %c0_i32_0 : i32, i32
  }
  func.func @transform_4(%arg0: i32, %arg1: i32) -> (i32, i32) {
    %c0_i32 = arith.constant 0 : i32
    %c0_i32_0 = arith.constant 0 : i32
    %c0_i32_1 = arith.constant 0 : i32
    return %c0_i32, %c0_i32_0 : i32, i32
  }
  func.func @transform_5(%arg0: i32, %arg1: i32) -> (i32, i32) {
    %c0_i32 = arith.constant 0 : i32
    %c0_i32_0 = arith.constant 0 : i32
    %c0_i32_1 = arith.constant 0 : i32
    return %c0_i32, %c0_i32_0 : i32, i32
  }
  func.func @transform_6(%arg0: i32, %arg1: i32) -> (i32, i32, i32, i32) {
    %c0_i32 = arith.constant 0 : i32
    %c0_i32_0 = arith.constant 0 : i32
    %c0_i32_1 = arith.constant 0 : i32
    return %arg0, %c0_i32, %arg1, %c0_i32_0 : i32, i32, i32, i32
  }
  func.func @transform_7(%arg0: i32, %arg1: i32) -> (i32, i32, i32, i32) {
    %c0_i32 = arith.constant 0 : i32
    %c0_i32_0 = arith.constant 0 : i32
    %c0_i32_1 = arith.constant 0 : i32
    return %arg0, %c0_i32, %arg1, %c0_i32_0 : i32, i32, i32, i32
  }
  func.func @transform_8(%arg0: i32, %arg1: i32) -> (i32, i32, i32, i32) {
    %c0_i32 = arith.constant 0 : i32
    %c0_i32_0 = arith.constant 0 : i32
    %c0_i32_1 = arith.constant 0 : i32
    return %arg0, %c0_i32, %arg1, %c0_i32_0 : i32, i32, i32, i32
  }
}

</mosaic_0001>

<bundles_post_ra>
// kernel: tpu_custom_call.1
= control target key start
LH: loop header
LB: loop body
LE: loop exit
PB: predicated region body
PF: predicated region fallthrough
CT: control target
= control target key end

     0   :  { %s1974_s0 = inlined_call_operand.hbm [shape: bf16[2,8,32], index: 0, kind: input, shape index: {}]   ;;  %s1975_s1 = inlined_call_operand.hbm [shape: bf16[2,8,32], index: 1, kind: input, shape index: {}]   ;;  %s1976_s2 = inlined_call_operand.hbm [shape: bf16[2,8,32], index: 2, kind: input, shape index: {}]   ;;  %s1977_s3 = inlined_call_operand.hbm [shape: bf16[32,32], index: 3, kind: input, shape index: {}]   ;;  %s1978_s4 = inlined_call_operand.hbm [shape: bf16[32,32], index: 4, kind: input, shape index: {}]   ;;  %s1979_s5 = inlined_call_operand.hbm [shape: bf16[32,32], index: 5, kind: input, shape index: {}]   ;;  %s1980_s6 = inlined_call_operand.hbm [shape: bf16[2,4,8,8], index: 6, kind: output, shape index: {0}]   ;;  %s1981_s7 = inlined_call_operand.hbm [shape: bf16[2,4,8,8], index: 7, kind: output, shape index: {1}]   ;;  %s1982_s8 = inlined_call_operand.hbm [shape: bf16[2,4,8,8], index: 8, kind: output, shape index: {2}]  }
   0x1   :  { %2001 = sst [smem:[#allocation29_spill]] %s1975_s1 }
   0x2   :  { %2002 = sst [smem:[#allocation30_spill]] %s1977_s3 }
   0x3   :  { %2003 = sst [smem:[#allocation31_spill]] %s1978_s4 }
   0x4   :  { %14 = vsyncpa [#allocation3], 0 }
   0x5   :  { %16 = vsyncpa [#allocation3 + $0x1], 0 }
   0x6   :  { %17 = vsyncpa [#allocation6], 0 }
   0x7   :  { %19 = vsyncpa [#allocation6 + $0x1], 0 }
   0x8   :  { %20 = vsyncpa [#allocation9], 0 }
   0x9   :  { %21 = vsyncpa [#allocation12], 0 }
   0xa   :  { %22 = vsyncpa [#allocation4], 0 }
   0xb   :  { %24 = vsyncpa [#allocation4 + $0x1], 0 }
   0xc   :  { %25 = vsyncpa [#allocation15], 0 }
   0xd   :  { %27 = vsyncpa [#allocation15 + $0x1], 0  ;;  %s1604_s27 = smov 0   ;;  %s1606_s28 = smov 0  }
   0xe   :  { %s1608_s29 = smov 0   ;;  %s1610_s30 = smov 0  }
   0xf   :  { %s1612_s9 = smov 0   ;;  %s1614_s10 = smov 0  }
  0x10 LB: > { %2004 = sst [smem:[#allocation23_spill]] %s1519_s27  ;;  %s1635_s11 = sadd.s32 4294967295, %s1539_s10   ;;  %s1539_s10 = sphi %s1614_s10, %s33_s10   ;;  %s1535_s9 = sphi %s1612_s9, %s2042_s9   ;;  %s1531_s30 = sphi %s1610_s30, %s2046_s30   ;;  %s1527_s29 = sphi %s1608_s29, %s2045_s29   ;;  %s1523_s28 = sphi %s1606_s28, %s2044_s28   ;;  %s1519_s27 = sphi %s1604_s27, %s2043_s27  }
  0x11   : > { %2005 = sst [smem:[#allocation24_spill]] %s1535_s9  ;;  %s1983_s12 = sadd.s32 4294967294, %s1539_s10  }
  0x12   : > { %2006 = sst [smem:[#allocation25_spill]] %s1539_s10  ;;  %p67_p0 = scmp.ne.s32.totalorder %s1523_s28, %s1519_s27 }
  0x13   : > { %p1995_p1 = scmp.eq.s32.totalorder %s1635_s11, 0  ;;  %p218_p3 = scmp.eq.s32.totalorder %s1983_s12, 1 }
  0x14   : > { %p1009_p5 = scmp.ge.s32.totalorder %s1539_s10, 1  ;;  %p281_p7 = scmp.lt.s32.totalorder %s1539_s10, 3 }
  0x15   : > { %p1646_p4 = por %p1995_p1, %p67_p0  ;;  %p1651_p6 = por %p218_p3, %p67_p0 }
  0x16   : > { %p1656_p8 = pnand %p1009_p5, %p281_p7  ;;  %s1541_s16 = smov [#allocation8]  }
  0x17   : > { %s2007_s13 = scalar_select %p1646_p4, 1, 0 }
  0x18   : > { %s2008_s14 = scalar_select %p1651_p6, 1, 0 }
  0x19   : > { %s2010_s15 = scalar_select %p1656_p8, 1, 0 }
  0x1a   : > { %2009 = sst [smem:[#allocation26_spill]] %s2008_s14  ;;  %s293_s17 = sshll.u32 %s1541_s16, 4  ;;  %s294_s17 = int_to_ptr.vmem [resolvable:$true] %s293_s17 }
  0x1b   : > { %p1125_p9 = pneg %p1656_p8  ;;  %s45_s19 = sadd.s32 1, %s1535_s9 }
  0x1c   : > { %s1240_s20 = scalar_lea.vmem %s294_s17, 256  ;;  %p1248_p5 = scmp.lt.s32.totalorder %s294_s17, %s294_s17 }
  0x1d   : > { %p1665_p11 = pnand %p1125_p9, %p1995_p1  ;;  %p1241_p13 = scmp.ne.s32.totalorder %s294_s17, %s1240_s20 }
  0x1e   : > { %p1249_p7 = scmp.lt.s32.totalorder %s1240_s20, %s1240_s20 }
  0x1f   : > { %p1996_p12 = pneg %p1665_p11 }
  0x20   : > { %p1250_p2 = por %p1249_p7, %p1248_p5 }
  0x21   : > { %p1243_p0 = pnand %p1241_p13, %p1996_p12 }
  0x23   : > { %p1244_p3 = pneg %p1243_p0 }
  0x25   : > { %p1251_p10 = pnand %p1250_p2, %p1244_p3 }
  0x27   : > { %1254 = shalt.err (!%p1251_p10)
}
  0x28   : > { %s1984_s21 = smov 64   ;;  %s1986_s22 = smov 4  }
  0x29   : > { %s2012_s3 = sld [smem:[#allocation30_spill]]  ;;  %p47_p2 = scmp.ge.s32.totalorder %s45_s19, 2 }
  0x2a   : > { %s54_s25 = sadd.s32 1, %s1527_s29  ;;  %p61_p9 = scmp.ne.s32.totalorder %s1527_s29, %s1523_s28 }
  0x2b   : > { %p62_p10 = scmp.eq.s32.totalorder %s1539_s10, 0  ;;  %s2048_s19 = smov (%p47_p2, %s45_s19), 0 }
  0x2c   : > { %2013 = sst [smem:[#allocation27_spill]] %s2048_s19  ;;  %p2014_p0 = scmp.eq.s32.totalorder %s1635_s11, 1 }
  0x2d   : > { %p63_p13 = por %p62_p10, %p61_p9  ;;  %s49_s16 = ssub.s32 %s1535_s9, %s2048_s19 }
  0x2e   : > { %p1691_p3 = por %p2014_p0, %p61_p9  ;;  %p1158_p5 = scmp.lt.s32.totalorder %s1539_s10, 2 }
  0x2f   : > { %1128 = dma.hbm_to_vmem [thread:$0]  (!%p1665_p11), %s2012_s3, 256, %s294_s17, [#allocation9], %s1984_s21, %s1984_s21, %s1986_s22  }
  0x30   : > { %s2015_s26 = scalar_select %p1691_p3, 1, 0 }
  0x31   : > { %p52_p7 = scmp.eq.s32.totalorder %s49_s16, 0  ;;  %s1989_s20 = sand.u32 1, %s1527_s29  }
  0x32   : > { %s1701_s17 = sshll.u32 %s1989_s20, 2  ;;  %s1704_s23 = sshll.u32 %s1535_s9, 6 }
  0x33   : > { %s1707_s24 = scalar_select %p52_p7, %s1527_s29, %s54_s25  }
  0x34   : > { %p1709_p2 = pnand %p1158_p5, %p63_p13  ;;  %s352_s21 = sand.u32 1, %s1539_s10  }
  0x35   : > { %2016 = sst [smem:[#allocation28_spill]] %s1707_s24  ;;  %s356_s19 = scalar_lea.vmem [#allocation5], %s1701_s17 }
  0x36   : > { %s2018_s1 = sld [smem:[#allocation29_spill]]  ;;  %s364_s20 = sshll.u32 %s356_s19, 4  ;;  %s365_s20 = int_to_ptr.vmem [resolvable:$true] %s364_s20 }
  0x37   : > { %s1544_s14 = smov [#allocation10]   ;;  %s1719_s27 = scalar_lea.sflag [#allocation6], %s352_s21 }
  0x38   : > { %s306_s9 = sshll.u32 %s1544_s14, 4  ;;  %p1997_p9 = pneg %p1709_p2  ;;  %s307_s9 = int_to_ptr.vmem [resolvable:$true] %s306_s9 }
  0x39   : > { %s1268_s25 = scalar_lea.vmem %s365_s20, 64  ;;  %s1545_s24 = smov [#allocation5]  }
  0x3a   : > { %p1269_p10 = scmp.ne.s32.totalorder %s365_s20, %s1268_s25  ;;  %s1273_s10 = sshll.u32 %s1545_s24, 4  ;;  %s1274_s10 = int_to_ptr.vmem [resolvable:$false] %s1273_s10 }
  0x3b   : > { %s1275_s3 = scalar_lea.vmem %s1274_s10, 128  ;;  %p1276_p5 = scmp.lt.s32.totalorder %s365_s20, %s1274_s10 }
  0x3c   : > { %s362_s16 = scalar_lea.hbm %s2018_s1, %s1704_s23  ;;  %p1271_p13 = pnand %p1269_p10, %p1997_p9 }
  0x3d   : > { %p1277_p7 = scmp.lt.s32.totalorder %s1275_s3, %s1268_s25 }
  0x3e   : > { %p1272_p0 = pneg %p1271_p13 }
  0x3f   : > { %p1278_p1 = por %p1277_p7, %p1276_p5 }
  0x41   : > { %p1279_p12 = pnand %p1278_p1, %p1272_p0 }
  0x43   : > { %1282 = shalt.err (!%p1279_p12)
}
  0x44   : > { %1141 = dma.hbm_to_vmem [thread:$0]  (!%p1709_p2), %s362_s16, 64, %s365_s20, %s1719_s27  }
  0x45   : > { %s1294_s14 = scalar_lea.vmem %s307_s9, 256  ;;  %p2019_p10 = pneg %p1665_p11 }
  0x46   : > { %p1295_p6 = scmp.ne.s32.totalorder %s307_s9, %s1294_s14  ;;  %p1302_p3 = scmp.lt.s32.totalorder %s307_s9, %s307_s9 }
  0x47   : > { %p1303_p4 = scmp.lt.s32.totalorder %s1294_s14, %s1294_s14 }
  0x48   : > { %p1297_p13 = pnand %p1295_p6, %p2019_p10 }
  0x49   : > { %p1304_p8 = por %p1303_p4, %p1302_p3 }
  0x4a   : > { %p1298_p9 = pneg %p1297_p13 }
  0x4c   : > { %p1305_p5 = pnand %p1304_p8, %p1298_p9 }
  0x4e   : > { %1308 = shalt.err (!%p1305_p5)
}
  0x4f   : > { %s2020_s10 = smov 4   ;;  %s2021_s19 = smov 64  }
  0x50   : > { %s2022_s4 = sld [smem:[#allocation31_spill]]  ;;  %s1546_s20 = smov [#allocation11]  }
  0x51   : > { %s319_s24 = sshll.u32 %s1546_s20, 4  ;;  %p2023_p6 = pmov %p2019_p10  ;;  %s320_s24 = int_to_ptr.vmem [resolvable:$true] %s319_s24 }
  0x52   : > { %s1320_s16 = scalar_lea.vmem %s320_s24, 256  ;;  %p1328_p12 = scmp.lt.s32.totalorder %s320_s24, %s320_s24 }
  0x53   : > { %p1321_p1 = scmp.ne.s32.totalorder %s320_s24, %s1320_s16  ;;  %p1329_p3 = scmp.lt.s32.totalorder %s1320_s16, %s1320_s16 }
  0x55   : > { %p1323_p4 = pnand %p1321_p1, %p2023_p6  ;;  %p1330_p9 = por %p1329_p3, %p1328_p12 }
  0x56   : > { %1131 = dma.hbm_to_vmem [thread:$0]  (!%p1665_p11), %s2022_s4, 256, %s307_s9, [#allocation9], %s2021_s19, %s2021_s19, %s2020_s10  }
  0x57   : > { %p1324_p8 = pneg %p1323_p4 }
  0x59   : > { %p1331_p0 = pnand %p1330_p9, %p1324_p8 }
  0x5b   : > { %1334 = shalt.err (!%p1331_p0)
}
  0x5c   : > { %1134 = dma.hbm_to_vmem [thread:$0]  (!%p1665_p11), %s1979_s5, 256, %s320_s24, [#allocation12], %s2021_s19, %s2021_s19, %s2020_s10  }
  0x5d   : > { %s343_s21 = scalar_lea.hbm %s1974_s0, %s1704_s23  ;;  %s337_s22 = scalar_lea.vmem [#allocation2], %s1701_s17 }
  0x5e   : > { %s345_s20 = sshll.u32 %s337_s22, 4  ;;  %s2024_s16 = sand.u32 1, %s1527_s29   ;;  %s346_s20 = int_to_ptr.vmem [resolvable:$true] %s345_s20 }
  0x5f   : > { %s334_s18 = scalar_lea.sflag [#allocation3], %s2024_s16  ;;  %s1348_s1 = scalar_lea.vmem %s346_s20, 64 }
  0x60   : > { %p1349_p7 = scmp.ne.s32.totalorder %s346_s20, %s1348_s1  ;;  %p2025_p10 = pneg %p1709_p2 }
  0x61   : > { %s1547_s9 = smov [#allocation2]  }
  0x62   : > { %p1351_p13 = pnand %p1349_p7, %p2025_p10  ;;  %s1353_s25 = sshll.u32 %s1547_s9, 4  ;;  %s1354_s25 = int_to_ptr.vmem [resolvable:$false] %s1353_s25 }
  0x63   : > { %s1355_s4 = scalar_lea.vmem %s1354_s25, 128  ;;  %p1356_p11 = scmp.lt.s32.totalorder %s346_s20, %s1354_s25 }
  0x64   : > { %p1352_p5 = pneg %p1351_p13  ;;  %p1357_p1 = scmp.lt.s32.totalorder %s1355_s4, %s1348_s1 }
  0x66   : > { %p1358_p6 = por %p1357_p1, %p1356_p11 }
  0x68   : > { %p1359_p4 = pnand %p1358_p6, %p1352_p5 }
  0x6a   : > { %1362 = shalt.err (!%p1359_p4)
}
  0x6b   : > { %1138 = dma.hbm_to_vmem [thread:$0]  (!%p1709_p2), %s343_s21, 64, %s346_s20, %s334_s18  }
  0x6c   : > { %s381_s24 = scalar_lea.hbm %s1976_s2, %s1704_s23  ;;  %s375_s3 = scalar_lea.vmem [#allocation7], %s1701_s17 }
  0x6d   : > { %s383_s14 = sshll.u32 %s375_s3, 4  ;;  %p2026_p12 = pmov %p2025_p10  ;;  %s384_s14 = int_to_ptr.vmem [resolvable:$true] %s383_s14 }
  0x6e   : > { %s1376_s22 = scalar_lea.vmem %s384_s14, 64  ;;  %s1548_s1 = smov [#allocation7]  }
  0x6f   : > { %p1377_p8 = scmp.ne.s32.totalorder %s384_s14, %s1376_s22  ;;  %s1381_s4 = sshll.u32 %s1548_s1, 4  ;;  %s1382_s4 = int_to_ptr.vmem [resolvable:$false] %s1381_s4 }
  0x70   : > { %s1383_s16 = scalar_lea.vmem %s1382_s4, 128  ;;  %p1384_p0 = scmp.lt.s32.totalorder %s384_s14, %s1382_s4 }
  0x71   : > { %p1379_p3 = pnand %p1377_p8, %p2026_p12  ;;  %p1385_p7 = scmp.lt.s32.totalorder %s1383_s16, %s1376_s22 }
  0x73   : > { %p1380_p9 = pneg %p1379_p3  ;;  %p1386_p10 = por %p1385_p7, %p1384_p0 }
  0x75   : > { %p1387_p13 = pnand %p1386_p10, %p1380_p9 }
  0x77   : > { %1390 = shalt.err (!%p1387_p13)
}
  0x78   : > { %1144 = dma.hbm_to_vmem [thread:$0]  (!%p1709_p2), %s381_s24, 64, %s384_s14, %s1719_s27  }
  0x79   : > { %p2027_p5 = scmp.ne.s32.totalorder %s2010_s15, 0 }
  0x7a   : > { %s1777_s17 = sand.u32 (!%p2027_p5), 1, %s1523_s28   ;;  %p2028_p11 = scmp.ne.s32.totalorder (!%p2027_p5), %s2007_s13, 0 }
  0x7b   : > { %392 = sbr.rel (%p2027_p5) target bundleno = 522 (0x20a), region = 44  ;;  %s1780_s23 = sshll.u32 (!%p2027_p5), %s1777_s17, 2 }
  0x7c   : > { %s395_s21 = scalar_lea.sflag (!%p2027_p5), [#allocation3], %s1777_s17  ;;  %s398_s20 = scalar_lea.vmem (!%p2027_p5), [#allocation2], %s1780_s23 }
  0x80   : > { %1494 = dma.done.wait (%p2028_p11), %s395_s21, 64  }
  0x81   : > { %1496 = vsyncadd (%p2028_p11), %s395_s21, 4294967232  ;;  %s403_s27 = sand.u32 1, %s1635_s11   ;;  %s407_s15 = scalar_lea.vmem [#allocation5], %s1780_s23 }
  0x82   : > { %s404_s12 = scalar_lea.sflag [#allocation6], %s403_s27 }
  0x83   : > { %1498 = dma.done.wait (%p2028_p11), %s404_s12, 128  }
  0x84   : > { %1500 = vsyncadd (%p2028_p11), %s404_s12, 4294967168  ;;  %s416_s18 = scalar_lea.vmem [#allocation7], %s1780_s23  ;;  %p2029_p2 = scmp.eq.s32.totalorder %s1635_s11, 0 }
  0x86   : > { %1502 = dma.done.wait (%p2029_p2), [#allocation9], 512   ;;  %p2030_p1 = pmov %p2029_p2 }
  0x88   : > { %1504 = vsyncadd (%p2030_p1), [#allocation9], 4294966784  ;;  %p2031_p6 = pmov %p2030_p1 }
  0x89   : > { %p2032_p4 = pmov %p2030_p1 }
  0x8a   : > { %1506 = dma.done.wait (%p2031_p6), [#allocation12], 256  }
  0x8b   : > { %1508 = vsyncadd (%p2032_p4), [#allocation12], 4294967040  ;;  %v1549_v0 = vmov 0.0   ;;  %vm1550_vm0 = vmmov 0   ;;  %v1223_v1 = vld [vmem:[#allocation8 + $0x8] sm:$0xff]   ;;  %v1224_v2 = vld [vmem:[#allocation10 + $0x8] sm:$0xff]  }
  0x8c   : > { %1077 = vmatprep.subr.bf16.mxu0 %v1549_v0  ;;  %1085 = vmatprep.subr.bf16.mxu1 %v1549_v0  ;;  %v1225_v3 = vld [vmem:[#allocation8] sm:$0xff]   ;;  %v1226_v4 = vld [vmem:[#allocation10] sm:$0xff]   ;;  %v482_v5 = vld [vmem:[%s398_s20] sm:$0xf]  ;;  %vm501_vm1 = vcmask 261120   ;;  %s1027_s13 = sshll.u32 %s1777_s17, 4 }
  0x8d   : > { %1081 = vmatprep.mubr.msk.bf16.mxu0 %vm1550_vm0, %v1549_v0  ;;  %1089 = vmatprep.mubr.msk.bf16.mxu1 %vm1550_vm0, %v1549_v0  ;;  %v1227_v6 = vld [vmem:[#allocation11 + $0x8] sm:$0xff]   ;;  %v483_v7 = vld [vmem:[%s407_s15] sm:$0xf]  ;;  %v1228_v8 = vld [vmem:[#allocation11] sm:$0xff]   ;;  %vm665_vm2 = vcmask 60416   ;;  %s1811_s9 = scalar_lea.vmem [#allocation14], %s1027_s13 }
  0x8e   : > { %1078 = vmatpush3.bf16.msra.mxu0 %v1223_v1  ;;  %1086 = vmatpush3.bf16.msra.mxu1 %v1224_v2  ;;  %v484_v9 = vld [vmem:[%s416_s18] sm:$0xf]  ;;  %s1551_s25 = smov 104   ;;  %s1552_s10 = smov 120  }
  0x8f   : > { %1079 = vmatprep.subr.bf16.mxu0 %v1549_v0  ;;  %1087 = vmatprep.subr.bf16.mxu1 %v1549_v0  ;;  %s1815_s19 = scalar_lea.vmem [#allocation13], %s1027_s13  ;;  %s1553_s24 = smov 112  }
  0x90   : > { %s1819_s3 = scalar_lea.vmem [#allocation16], %s1027_s13  ;;  %s767_s14 = sshll.u32 %s1811_s9, 4  ;;  %s1827_s14 = int_to_ptr.vmem [resolvable:$true] %s767_s14 }
  0x91   : > { %s1825_s22 = sshll.u32 %s1531_s30, 8  ;;  %s1845_s30 = scalar_lea.sflag [#allocation15], %s403_s27 }
  0x92   : > { %1080 = vmatpush3.bf16.msra.mxu0 %v1225_v3  ;;  %1088 = vmatpush3.bf16.msra.mxu1 %v1226_v4  ;;  %s1837_s16 = scalar_lea.hbm %s1981_s7, %s1825_s22  ;;  %s1391_s23 = scalar_lea.vmem %s1827_s14, 256 }
  0x93   : > { %1093 = vmatprep.subr.bf16.mxu0 %v1549_v0  ;;  %p1392_p8 = scmp.ne.s32.totalorder %s1827_s14, %s1391_s23  ;;  %p2033_p12 = scmp.ne.s32.totalorder %s2015_s26, 0 }
  0x94   : > { %s1554_s21 = smov [#allocation14]  }
  0x95   : > { %1082 = vmatmul.mubr.msk.bf16.vlgmr.msra.gmra.mxu0 %vm501_vm1, %v482_v5  ;;  %1090 = vmatmul.mubr.msk.bf16.vlgmr.msra.gmra.mxu1 %vm501_vm1, %v483_v7  ;;  %p1393_p3 = pnand %p1392_p8, %p2033_p12  ;;  %s1395_s20 = sshll.u32 %s1554_s21, 4  ;;  %s1396_s20 = int_to_ptr.vmem [resolvable:$false] %s1395_s20 }
  0x96   : > { %1094 = vmatpush3.bf16.msra.mxu0 %v1227_v6  ;;  %1097 = vmatprep.mubr.msk.bf16.mxu0 %vm1550_vm0, %v1549_v0  ;;  %s1397_s12 = scalar_lea.vmem %s1396_s20, 512  ;;  %p1398_p0 = scmp.lt.s32.totalorder %s1827_s14, %s1396_s20 }
  0x97   : > { %1095 = vmatprep.subr.bf16.mxu0 %v1549_v0  ;;  %p1394_p9 = pneg %p1393_p3  ;;  %p1399_p7 = scmp.lt.s32.totalorder %s1397_s12, %s1391_s23 }
  0x99   : > { %p1400_p10 = por %p1399_p7, %p1398_p0 }
  0x9a   : > { %1096 = vmatpush3.bf16.msra.mxu0 %v1228_v8 }
  0x9b   : > { %p1401_p13 = pnand %p1400_p10, %p1394_p9 }
  0x9d   : > { %1098 = vmatmul.mubr.msk.bf16.vlgmr.msra.gmra.mxu0 %vm501_vm1, %v484_v9 }
 0x155   : > { %v539_v10 = vpop.f32.mrf.mxu0  ;;  %v599_v12 = vpop.f32.mrf.mxu1 }
 0x156   : > { %v545_v11 = vmul.f32 0.35355338, %v539_v10  ;;  %v667_v13 = vpack.c.bf16 %v599_v12, %v599_v12 }
 0x157   : > { %v1083_v14 = vpop.f32.mrf.mxu0  ;;  %v1091_v16 = vpop.f32.mrf.mxu1 }
 0x158   : > { %v664_v15 = vpack.c.bf16 %v545_v11, %v545_v11  ;;  %668 = vst.msk [vmem:[%s1811_s9] sm:$0xf] %vm665_vm2, %v667_v13  ;;  %715 = vrot.lane.b32.xlu1 %v667_v13, %s1551_s25  ;;  %682 = vrot.lane.b32.xlu0 %v667_v13, %s1552_s10 }
 0x159   : > { %v542_v17 = vpop.f32.mrf.mxu0  ;;  %v602_v18 = vpop.f32.mrf.mxu1 }
 0x15a   : > { %666 = vst.msk [vmem:[%s1815_s19] sm:$0xf] %vm665_vm2, %v664_v15 }
 0x15b   : > { %v1084_v19 = vpop.f32.mrf.mxu0  ;;  %v1092_v20 = vpop.f32.mrf.mxu1 }
 0x15c   : > { %700 = vrot.lane.b32.xlu0 %v667_v13, %s1553_s24  ;;  %674 = vrot.lane.b32.xlu1 %v664_v15, %s1552_s10 }
 0x15d   : > { %v658_v21 = vpop.f32.mrf.mxu0 }
 0x15e   : > { %v669_v22 = vpack.c.bf16 %v658_v21, %v658_v21 }
 0x15f   : > { %v1099_v23 = vpop.f32.mrf.mxu0 }
 0x160   : > { %670 = vst.msk [vmem:[%s1819_s3] sm:$0xf] %vm665_vm2, %v669_v22  ;;  %695 = vrot.lane.b32.xlu1 %v664_v15, %s1553_s24  ;;  %690 = vrot.lane.b32.xlu0 %v669_v22, %s1552_s10 }
 0x161   : > { %v661_v24 = vpop.f32.mrf.mxu0 }
 0x163   : > { %v1100_v25 = vpop.f32.mrf.mxu0 }
 0x164   : > { %710 = vrot.lane.b32.xlu1 %v664_v15, %s1551_s25  ;;  %705 = vrot.lane.b32.xlu0 %v669_v22, %s1553_s24 }
 0x168   : > { %720 = vrot.lane.b32.xlu0 %v669_v22, %s1551_s25 }
 0x1ca   : > { %v716_v26 = vpop.permute.xlu1 %715  ;;  %v683_v27 = vpop.permute.xlu0 %682 }
 0x1cb   : > { %1049 = vst.msk [vmem:[%s1811_s9 + $0xc] sm:$0xf] %vm665_vm2, %v716_v26  ;;  %1042 = vst.msk [vmem:[%s1811_s9 + $0x4] sm:$0xf] %vm665_vm2, %v683_v27 }
 0x1ce   : > { %v701_v28 = vpop.permute.xlu0 %700  ;;  %v675_v29 = vpop.permute.xlu1 %674 }
 0x1cf   : > { %1046 = vst.msk [vmem:[%s1811_s9 + $0x8] sm:$0xf] %vm665_vm2, %v701_v28  ;;  %1040 = vst.msk [vmem:[%s1815_s19 + $0x4] sm:$0xf] %vm665_vm2, %v675_v29 }
 0x1d0   : > { %1404 = shalt.err (!%p1401_p13)
}
 0x1d1   : > { %s1405_s11 = scalar_lea.hbm %s1837_s16, 256  ;;  %s1409_s18 = scalar_lea.hbm %s1981_s7, 512 }
 0x1d2   : > { %p1406_p5 = scmp.ne.s32.totalorder %s1837_s16, %s1405_s11  ;;  %p1410_p1 = scmp.lt.s32.totalorder %s1837_s16, %s1981_s7 }
 0x1d3   : > { %p1411_p6 = scmp.lt.s32.totalorder %s1409_s18, %s1405_s11 }
 0x1d4   : > { %p1407_p11 = pnand %p1406_p5, %p2033_p12 }
 0x1d5   : > { %p1412_p4 = por %p1411_p6, %p1410_p1 }
 0x1d6   : > { %p1408_p2 = pneg %p1407_p11 }
 0x1d8   : > { %p1413_p8 = pnand %p1412_p4, %p1408_p2 }
 0x1da   : > { %1416 = shalt.err (!%p1413_p8)
}
 0x1db   : > { %s1555_s25 = smov 64   ;;  %s1556_s10 = smov 4   ;;  %v696_v30 = vpop.permute.xlu1 %695  ;;  %v691_v31 = vpop.permute.xlu0 %690 }
 0x1dc   : > { %1120 = dma.vmem_to_hbm [thread:$0]  (%p2033_p12), %s1827_s14, 256, %s1837_s16, %s1845_s30, %s1555_s25, %s1555_s25, %s1556_s10  }
 0x1dd   : > { %s750_s24 = sshll.u32 %s1815_s19, 4  ;;  %1045 = vst.msk [vmem:[%s1815_s19 + $0x8] sm:$0xf] %vm665_vm2, %v696_v30  ;;  %1044 = vst.msk [vmem:[%s1819_s3 + $0x4] sm:$0xf] %vm665_vm2, %v691_v31  ;;  %s1882_s23 = scalar_lea.hbm %s1980_s6, %s1825_s22  ;;  %s1876_s24 = int_to_ptr.vmem [resolvable:$true] %s750_s24 }
 0x1de   : > { %s784_s21 = sshll.u32 %s1819_s3, 4  ;;  %s726_s14 = scalar_lea.sflag [#allocation4], %s1777_s17  ;;  %s1915_s21 = int_to_ptr.vmem [resolvable:$true] %s784_s21 }
 0x1df   : > { %v711_v32 = vpop.permute.xlu1 %710  ;;  %v706_v33 = vpop.permute.xlu0 %705  ;;  %s1417_s16 = scalar_lea.vmem %s1876_s24, 256  ;;  %s1557_s20 = smov [#allocation13]  }
 0x1e0   : > { %1048 = vst.msk [vmem:[%s1815_s19 + $0xc] sm:$0xf] %vm665_vm2, %v711_v32  ;;  %1047 = vst.msk [vmem:[%s1819_s3 + $0x8] sm:$0xf] %vm665_vm2, %v706_v33  ;;  %p1418_p3 = scmp.ne.s32.totalorder %s1876_s24, %s1417_s16  ;;  %s1421_s12 = sshll.u32 %s1557_s20, 4  ;;  %s1422_s12 = int_to_ptr.vmem [resolvable:$false] %s1421_s12 }
 0x1e1   : > { %s1423_s11 = scalar_lea.vmem %s1422_s12, 512  ;;  %p1424_p7 = scmp.lt.s32.totalorder %s1876_s24, %s1422_s12 }
 0x1e2   : > { %p1419_p9 = pnand %p1418_p3, %p2033_p12  ;;  %p1425_p10 = scmp.lt.s32.totalorder %s1423_s11, %s1417_s16 }
 0x1e4   : > { %p1420_p0 = pneg %p1419_p9  ;;  %p1426_p13 = por %p1425_p10, %p1424_p7 }
 0x1e6   : > { %p1427_p5 = pnand %p1426_p13, %p1420_p0 }
 0x1e8   : > { %1430 = shalt.err (!%p1427_p5)
}
 0x1e9   : > { %s1431_s19 = scalar_lea.hbm %s1882_s23, 256  ;;  %s1435_s15 = scalar_lea.hbm %s1980_s6, 512 }
 0x1ea   : > { %p1432_p11 = scmp.ne.s32.totalorder %s1882_s23, %s1431_s19  ;;  %p1436_p6 = scmp.lt.s32.totalorder %s1882_s23, %s1980_s6 }
 0x1eb   : > { %p1437_p4 = scmp.lt.s32.totalorder %s1435_s15, %s1431_s19 }
 0x1ec   : > { %p1433_p2 = pnand %p1432_p11, %p2033_p12 }
 0x1ed   : > { %p1438_p8 = por %p1437_p4, %p1436_p6 }
 0x1ee   : > { %p1434_p1 = pneg %p1433_p2 }
 0x1f0   : > { %p1439_p3 = pnand %p1438_p8, %p1434_p1 }
 0x1f2   : > { %1442 = shalt.err (!%p1439_p3)
}
 0x1f3   : > { %1119 = dma.vmem_to_hbm [thread:$0]  (%p2033_p12), %s1876_s24, 256, %s1882_s23, %s726_s14, %s1555_s25, %s1555_s25, %s1556_s10   ;;  %v721_v34 = vpop.permute.xlu0 %720 }
 0x1f4   : > { %s1921_s4 = scalar_lea.hbm %s1982_s8, %s1825_s22  ;;  %1050 = vst.msk [vmem:[%s1819_s3 + $0xc] sm:$0xf] %vm665_vm2, %v721_v34  ;;  %s1443_s16 = scalar_lea.vmem %s1915_s21, 256 }
 0x1f5   : > { %p1444_p9 = scmp.ne.s32.totalorder %s1915_s21, %s1443_s16  ;;  %s1558_s24 = smov [#allocation16]  }
 0x1f6   : > { %s1447_s23 = sshll.u32 %s1558_s24, 4  ;;  %s1448_s23 = int_to_ptr.vmem [resolvable:$false] %s1447_s23 }
 0x1f7   : > { %p1445_p0 = pnand %p1444_p9, %p2033_p12  ;;  %s1449_s14 = scalar_lea.vmem %s1448_s23, 512 }
 0x1f8   : > { %p1450_p10 = scmp.lt.s32.totalorder %s1915_s21, %s1448_s23  ;;  %p1451_p13 = scmp.lt.s32.totalorder %s1449_s14, %s1443_s16 }
 0x1f9   : > { %p1446_p7 = pneg %p1445_p0 }
 0x1fa   : > { %p1452_p5 = por %p1451_p13, %p1450_p10 }
 0x1fc   : > { %p1453_p11 = pnand %p1452_p5, %p1446_p7 }
 0x1fe   : > { %1456 = shalt.err (!%p1453_p11)
}
 0x1ff   : > { %s1457_s22 = scalar_lea.hbm %s1921_s4, 256  ;;  %s1461_s12 = scalar_lea.hbm %s1982_s8, 512 }
 0x200   : > { %p1458_p2 = scmp.ne.s32.totalorder %s1921_s4, %s1457_s22  ;;  %p1462_p4 = scmp.lt.s32.totalorder %s1921_s4, %s1982_s8 }
 0x201   : > { %p1463_p8 = scmp.lt.s32.totalorder %s1461_s12, %s1457_s22 }
 0x202   : > { %p1459_p1 = pnand %p1458_p2, %p2033_p12 }
 0x203   : > { %p1464_p3 = por %p1463_p8, %p1462_p4 }
 0x204   : > { %p1460_p6 = pneg %p1459_p1 }
 0x206   : > { %p1465_p9 = pnand %p1464_p3, %p1460_p6 }
 0x208   : > { %1468 = shalt.err (!%p1465_p9)
}
 0x209   : > { %1121 = dma.vmem_to_hbm [thread:$0]  (%p2033_p12), %s1915_s21, 256, %s1921_s4, %s1845_s30, %s1555_s25, %s1555_s25, %s1556_s10  }
 0x20a PF: > { %s2034_s17 = sld [smem:[#allocation23_spill]] }
 0x20b   : > { %s2035_s27 = sld [smem:[#allocation26_spill]] }
 0x20c   : > { %s2036_s15 = sld [smem:[#allocation25_spill]] }
 0x210   : > { %s799_s18 = sand.u32 1, %s2034_s17  }
 0x211   : > { %p2037_p0 = scmp.ne.s32.totalorder %s2035_s27, 0  ;;  %s800_s13 = scalar_lea.sflag [#allocation4], %s799_s18 }
 0x212   : > { %p2038_p7 = scmp.ge.s32.totalorder %s2036_s15, 2 }
 0x214   : > { %p1146_p10 = pnand %p2038_p7, %p2037_p0 }
 0x216   : > { %p1147_p13 = pneg %p1146_p10 }
 0x218   : > { %1510 = dma.done.wait (%p1147_p13), %s800_s13, 256  }
 0x219   : > { %1512 = vsyncadd (%p1147_p13), %s800_s13, 4294967040  ;;  %s2039_s26 = sadd.s32 4294967294, %s2036_s15  }
 0x21a   : > { %s808_s9 = sand.u32 1, %s2039_s26  }
 0x21b   : > { %s809_s1 = scalar_lea.sflag [#allocation15], %s808_s9 }
 0x21c   : > { %1514 = dma.done.wait (%p1147_p13), %s809_s1, 512  }
 0x21d   : > { %1516 = vsyncadd (%p1147_p13), %s809_s1, 4294966784  ;;  %s33_s10 = sadd.s32 1, %s2036_s15   ;;  %s2040_s30 = sld [smem:[#allocation28_spill]] }
 0x21e   : > { %p30_p12 = scmp.ge.s32.totalorder %s33_s10, 4   ;;  %s2041_s25 = sld [smem:[#allocation24_spill]] }
 0x21f   : > { %s2042_s9 = sld [smem:[#allocation27_spill]]  ;;  %s2043_s27 = smov %s1523_s28 }
 0x220   : > { %s2044_s28 = smov %s1527_s29  ;;  %32 = sbr.rel (!%p30_p12) target bundleno = 16 (0x10), region = 166 }
 0x223   : > { %s2045_s29 = smov %s2040_s30 }
 0x224   : > { %s2046_s30 = smov %s2041_s25 }
 0x225   :  { %823 = vsyncpa [#allocation3], 1 }
 0x226   :  { %825 = vsyncpa [#allocation3 + $0x1], 1 }
 0x227   :  { %826 = vsyncpa [#allocation6], 1 }
 0x228   :  { %828 = vsyncpa [#allocation6 + $0x1], 1 }
 0x229   :  { %829 = vsyncpa [#allocation9], 1 }
 0x22a   :  { %830 = vsyncpa [#allocation12], 1 }
 0x22b   :  { %831 = vsyncpa [#allocation4], 1 }
 0x22c   :  { %833 = vsyncpa [#allocation4 + $0x1], 1 }
 0x22d   :  { %834 = vsyncpa [#allocation15], 1 }
 0x22e   :  { %836 = vsyncpa [#allocation15 + $0x1], 1 }

</bundles_post_ra>
